<compile_context>
chip_gen: v5e
topology: v5e:2x2
jax: 0.10.0
libtpu: 0.0.40
codegen_flags: <defaults>
</compile_context>

<pallas_src>
import functools
import math

import jax
import jax.numpy as jnp
from jax.experimental import pallas as pl
from jax.experimental.pallas import tpu as pltpu


def _transformer_kernel(
    x_ref,          # (TB, S, E)
    wqkv_ref,       # (E, 3E)   [scale folded into the Q third]
    bqkv_ref,       # (1, 3E)
    w1p_ref,        # (E, M)    [= Wo @ W1]
    b1p_ref,        # (1, M)    [= bo @ W1 + b1]
    w2r_ref,        # (1, M)    [mlp[2] weight as a row]
    b2_ref,         # (1, 1)
    o_ref,          # (1, TB, S)
    *, embed_dim: int,
):
    f32 = jnp.float32
    E = embed_dim

    x = x_ref[...]                                                  # (TB, S, E)

    # --- fused QKV projection: one MXU push, 3E output lanes ---
    qkv = jax.lax.dot_general(
        x, wqkv_ref[...], (((2,), (0,)), ((), ())),
        preferred_element_type=f32) + bqkv_ref[...]                 # (TB, S, 3E)
    q = qkv[:, :, 0 * E:1 * E]        # already scaled by 1/sqrt(E) via Wq/bq
    k = qkv[:, :, 1 * E:2 * E]
    v = qkv[:, :, 2 * E:3 * E]

    # --- scaled dot-product attention (batched over TB), stable softmax ---
    scores = jnp.einsum('bqd,bkd->bqk', q, k, preferred_element_type=f32)
    s_max = jnp.max(scores, axis=-1, keepdims=True)
    p = jnp.exp(scores - s_max)
    denom = jnp.sum(p, axis=-1, keepdims=True)
    attn = p * pl.reciprocal(denom, approx=True)                    # EUP divide
    ctx = jnp.einsum('bqk,bkd->bqd', attn, v, preferred_element_type=f32)

    # --- out_proj folded into mlp[0]: h = relu(ctx @ (Wo@W1) + (bo@W1 + b1)) ---
    h = jax.lax.dot_general(
        ctx, w1p_ref[...], (((2,), (0,)), ((), ())),
        preferred_element_type=f32) + b1p_ref[...]                  # (TB, S, M)
    h = jnp.maximum(h, 0.0)

    # --- mlp[2] (out_features=1): VPU multiply + lane reduction, off the MXU ---
    y = jnp.sum(h * w2r_ref[...], axis=-1) + b2_ref[...]            # (TB, S)

    o_ref[0] = y.astype(o_ref.dtype)


def _pick_batch_tile(B: int) -> int:
    """Largest divisor of B that still leaves >= 2 grid steps (v7x: 2 TCs)."""
    if B < 2:
        return max(B, 1)
    for tb in range(B // 2, 0, -1):
        if B % tb == 0:
            return tb
    return 1


def prepare_params(params, embed_dim: int):
    """One-time algebraic folding of the raw Linear weights (see header)."""
    (wq, bq, wk, bk, wv, bv, wo, bo, w1, b1, w2, b2) = params
    scale = jnp.float32(1.0 / math.sqrt(embed_dim))
    wqkv = jnp.concatenate([wq * scale, wk, wv], axis=1)            # (E, 3E)
    bqkv = jnp.concatenate([bq * scale, bk, bv], axis=1)            # (1, 3E)
    w1p = wo @ w1                                                   # (E, M)
    b1p = bo @ w1 + b1                                              # (1, M)
    w2r = w2.reshape(1, -1)                                         # (1, M)
    b2s = b2.reshape(1, 1)                                          # (1, 1)
    return wqkv, bqkv, w1p, b1p, w2r, b2s


def simple_transformer_forward(x, prepared, *, batch_tile=None):
    """x: (B, S, E) float32 -> (B, S, 1)."""
    wqkv, bqkv, w1p, b1p, w2r, b2s = prepared
    B, S, E = x.shape
    M = w1p.shape[1]
    tb = batch_tile if batch_tile is not None else _pick_batch_tile(B)
    assert B % tb == 0
    n_steps = B // tb

    kernel = functools.partial(_transformer_kernel, embed_dim=E)

    def const2(b):          # weights/biases: constant block -> stay VMEM-resident
        return (0, 0)

    out = pl.pallas_call(
        kernel,
        # Lane-dense output slab: (n_steps, TB, S); reshaped to (B, S, 1) below.
        out_shape=jax.ShapeDtypeStruct((n_steps, tb, S), x.dtype),
        grid=(n_steps,),
        in_specs=[
            pl.BlockSpec((tb, S, E), lambda b: (b, 0, 0)),               # x
            pl.BlockSpec((E, 3 * E), const2),                            # wqkv
            pl.BlockSpec((1, 3 * E), const2),                            # bqkv
            pl.BlockSpec((E, M), const2),                                # w1'
            pl.BlockSpec((1, M), const2),                                # b1'
            pl.BlockSpec((1, M), const2),                                # w2 row
            pl.BlockSpec((1, 1), const2),                                # b2
        ],
        out_specs=pl.BlockSpec((1, tb, S), lambda b: (b, 0, 0)),
        compiler_params=pltpu.CompilerParams(
            dimension_semantics=("parallel",),      # shard batch steps over TCs
            vmem_limit_bytes=32 * 1024 * 1024,
        ),
    )(x, wqkv, bqkv, w1p, b1p, w2r, b2s)

    return out.reshape(B, S, 1)


class SimpleTransformerPallas:
    """JAX/Pallas re-implementation of the PyTorch SimpleTransformer module."""

    def __init__(self, d, de, m, key):
        E = d + 2 * de
        self.embed_dim = E
        self.m = m

        def linear_init(k, fan_in, fan_out):
            kw, kb = jax.random.split(k)
            bound = 1.0 / math.sqrt(fan_in)
            w = jax.random.uniform(kw, (fan_in, fan_out), jnp.float32, -bound, bound)
            b = jax.random.uniform(kb, (1, fan_out), jnp.float32, -bound, bound)
            return w, b

        keys = jax.random.split(key, 6)
        self.wq, self.bq = linear_init(keys[0], E, E)
        self.wk, self.bk = linear_init(keys[1], E, E)
        self.wv, self.bv = linear_init(keys[2], E, E)
        self.wo, self.bo = linear_init(keys[3], E, E)   # attn out_proj
        self.w1, self.b1 = linear_init(keys[4], E, m)   # mlp[0]
        self.w2, self.b2 = linear_init(keys[5], m, 1)   # mlp[2]

        # One-time algebraic folding (QKV concat, scale fold, out_proj->mlp[0]).
        self.prepared = prepare_params(self.params(), E)

    def params(self):
        return (self.wq, self.bq, self.wk, self.bk, self.wv, self.bv,
                self.wo, self.bo, self.w1, self.b1, self.w2, self.b2)

    def __call__(self, x):
        return simple_transformer_forward(x, self.prepared)


if __name__ == "__main__":
    key = jax.random.PRNGKey(0)
    key, xk, pk = jax.random.split(key, 3)

    # Small shapes consistent with the module: embed_dim = d + 2*de = 16.
    d, de, m = 8, 4, 32
    B, S = 2, 8
    E = d + 2 * de

    model = SimpleTransformerPallas(d, de, m, pk)
    x = jax.random.normal(xk, (B, S, E), jnp.float32)

    y = model(x)
    jax.block_until_ready(y)

    # Pure-JAX reference (same math as nn.MultiheadAttention(num_heads=1) + MLP),
    # using the *unfolded* weights and an exact softmax divide.
    with jax.default_matmul_precision("highest"):
        scale = 1.0 / math.sqrt(E)
        q = x @ model.wq + model.bq
        k = x @ model.wk + model.bk
        v = x @ model.wv + model.bv
        scores = jnp.einsum("bse,bte->bst", q * scale, k)
        attn = jax.nn.softmax(scores, axis=-1)
        ctx = jnp.einsum("bst,bte->bse", attn, v)
        a_out = ctx @ model.wo + model.bo
        h = jnp.maximum(a_out @ model.w1 + model.b1, 0.0)
        y_ref = h @ model.w2 + model.b2                      # (B, S, 1)

    assert y.shape == (B, S, 1), y.shape
    err = float(jnp.max(jnp.abs(y - y_ref)))
    # Tolerance loosened slightly (2e-3): pl.reciprocal(approx=True) and the
    # offline Wo@W1 fold introduce small, bounded f32 drift vs. the reference.
    assert jnp.allclose(y, y_ref, atol=2e-3, rtol=2e-3), err

    print("KERNEL_OK")
</pallas_src>

<mosaic_0001>
module attributes {stable_mosaic.version = 11 : i64} {
  func.func @_transformer_kernel(%arg0: i32, %arg1: memref<1x8x16xf32, #tpu.memory_space<vmem>>, %arg2: memref<16x48xf32, #tpu.memory_space<vmem>>, %arg3: memref<1x48xf32, #tpu.memory_space<vmem>>, %arg4: memref<16x32xf32, #tpu.memory_space<vmem>>, %arg5: memref<1x32xf32, #tpu.memory_space<vmem>>, %arg6: memref<1x32xf32, #tpu.memory_space<vmem>>, %arg7: memref<1x1xf32, #tpu.memory_space<vmem>>, %arg8: memref<1x1x8xf32, #tpu.memory_space<vmem>>) attributes {dimension_semantics = [#tpu.dimension_semantics<parallel>], iteration_bounds = array<i64: 2>, scalar_prefetch = 0 : i64, scratch_operands = 0 : i64, tpu.core_type = #tpu.core_type<tc>, window_params = [{transform_indices = @transform_0, window_bounds = array<i64: 1, 8, 16>}, {pipeline_mode = #tpu.pipeline_mode<synchronous>, transform_indices = @transform_1, window_bounds = array<i64: 16, 48>}, {pipeline_mode = #tpu.pipeline_mode<synchronous>, transform_indices = @transform_2, window_bounds = array<i64: 1, 48>}, {pipeline_mode = #tpu.pipeline_mode<synchronous>, transform_indices = @transform_3, window_bounds = array<i64: 16, 32>}, {pipeline_mode = #tpu.pipeline_mode<synchronous>, transform_indices = @transform_4, window_bounds = array<i64: 1, 32>}, {pipeline_mode = #tpu.pipeline_mode<synchronous>, transform_indices = @transform_5, window_bounds = array<i64: 1, 32>}, {pipeline_mode = #tpu.pipeline_mode<synchronous>, transform_indices = @transform_6, window_bounds = array<i64: 1, 1>}, {transform_indices = @transform_7, window_bounds = array<i64: 1, 1, 8>}]} {
    %c0 = arith.constant 0 : index
    %c0_0 = arith.constant 0 : index
    %c0_1 = arith.constant 0 : index
    %0 = vector.load %arg1[%c0, %c0_0, %c0_1] : memref<1x8x16xf32, #tpu.memory_space<vmem>>, vector<1x8x16xf32>
    %c0_2 = arith.constant 0 : index
    %c0_3 = arith.constant 0 : index
    %1 = vector.load %arg2[%c0_2, %c0_3] : memref<16x48xf32, #tpu.memory_space<vmem>>, vector<16x48xf32>
    %cst = arith.constant dense<0.000000e+00> : vector<1x8x48xf32>
    %2 = tpu.matmul %0, %1, %cst {dimension_numbers = #tpu.dot_dimension_numbers<[2], [0], [0, 1], [1], [0, 0, 0, 1, 1, 1], [], []>} : vector<1x8x16xf32>, vector<16x48xf32>, vector<1x8x48xf32> -> vector<1x8x48xf32>
    %c0_4 = arith.constant 0 : index
    %c0_5 = arith.constant 0 : index
    %3 = vector.load %arg3[%c0_4, %c0_5] : memref<1x48xf32, #tpu.memory_space<vmem>>, vector<1x48xf32>
    %4 = vector.shape_cast %3 : vector<1x48xf32> to vector<1x1x48xf32>
    %5 = vector.broadcast %4 : vector<1x1x48xf32> to vector<1x8x48xf32>
    %6 = arith.addf %2, %5 : vector<1x8x48xf32>
    %7 = vector.extract_strided_slice %6 {offsets = [0, 0, 0], sizes = [1, 8, 16], strides = [1, 1, 1]} : vector<1x8x48xf32> to vector<1x8x16xf32>
    %8 = vector.extract_strided_slice %6 {offsets = [0, 0, 16], sizes = [1, 8, 16], strides = [1, 1, 1]} : vector<1x8x48xf32> to vector<1x8x16xf32>
    %9 = vector.extract_strided_slice %6 {offsets = [0, 0, 32], sizes = [1, 8, 16], strides = [1, 1, 1]} : vector<1x8x48xf32> to vector<1x8x16xf32>
    "tpu.trace_start"() <{level = 10 : i32, message = "bqd,bkd->bqk"}> : () -> ()
    %cst_6 = arith.constant dense<0.000000e+00> : vector<1x8x8xf32>
    %10 = tpu.matmul %7, %8, %cst_6 {dimension_numbers = #tpu.dot_dimension_numbers<[2], [2], [1], [1], [0, 0, 0, 1, 1, 1], [0], [0]>} : vector<1x8x16xf32>, vector<1x8x16xf32>, vector<1x8x8xf32> -> vector<1x8x8xf32>
    "tpu.trace_stop"() : () -> ()
    %cst_7 = arith.constant dense<0xFF800000> : vector<1x8xf32>
    %11 = vector.multi_reduction <maximumf>, %10, %cst_7 [2] : vector<1x8x8xf32> to vector<1x8xf32>
    %12 = vector.shape_cast %11 : vector<1x8xf32> to vector<1x8x1xf32>
    %13 = vector.broadcast %12 : vector<1x8x1xf32> to vector<1x8x8xf32>
    %14 = arith.subf %10, %13 : vector<1x8x8xf32>
    %15 = math.exp %14 : vector<1x8x8xf32>
    %cst_8 = arith.constant dense<0.000000e+00> : vector<1x8xf32>
    %16 = vector.multi_reduction <add>, %15, %cst_8 [2] : vector<1x8x8xf32> to vector<1x8xf32>
    %17 = vector.shape_cast %16 : vector<1x8xf32> to vector<1x8x1xf32>
    %18 = tpu.reciprocal %17 {approx = true} : vector<1x8x1xf32> -> vector<1x8x1xf32>
    %19 = vector.broadcast %18 : vector<1x8x1xf32> to vector<1x8x8xf32>
    %20 = arith.mulf %15, %19 : vector<1x8x8xf32>
    "tpu.trace_start"() <{level = 10 : i32, message = "bqk,bkd->bqd"}> : () -> ()
    %cst_9 = arith.constant dense<0.000000e+00> : vector<1x8x16xf32>
    %21 = tpu.matmul %20, %9, %cst_9 {dimension_numbers = #tpu.dot_dimension_numbers<[2], [1], [1], [2], [0, 0, 0, 1, 1, 2], [0], [0]>} : vector<1x8x8xf32>, vector<1x8x16xf32>, vector<1x8x16xf32> -> vector<1x8x16xf32>
    "tpu.trace_stop"() : () -> ()
    %c0_10 = arith.constant 0 : index
    %c0_11 = arith.constant 0 : index
    %22 = vector.load %arg4[%c0_10, %c0_11] : memref<16x32xf32, #tpu.memory_space<vmem>>, vector<16x32xf32>
    %cst_12 = arith.constant dense<0.000000e+00> : vector<1x8x32xf32>
    %23 = tpu.matmul %21, %22, %cst_12 {dimension_numbers = #tpu.dot_dimension_numbers<[2], [0], [0, 1], [1], [0, 0, 0, 1, 1, 1], [], []>} : vector<1x8x16xf32>, vector<16x32xf32>, vector<1x8x32xf32> -> vector<1x8x32xf32>
    %c0_13 = arith.constant 0 : index
    %c0_14 = arith.constant 0 : index
    %24 = vector.load %arg5[%c0_13, %c0_14] : memref<1x32xf32, #tpu.memory_space<vmem>>, vector<1x32xf32>
    %25 = vector.shape_cast %24 : vector<1x32xf32> to vector<1x1x32xf32>
    %26 = vector.broadcast %25 : vector<1x1x32xf32> to vector<1x8x32xf32>
    %27 = arith.addf %23, %26 : vector<1x8x32xf32>
    %cst_15 = arith.constant 0.000000e+00 : f32
    %28 = vector.broadcast %cst_15 : f32 to vector<1x8x32xf32>
    %29 = arith.maximumf %27, %28 : vector<1x8x32xf32>
    %c0_16 = arith.constant 0 : index
    %c0_17 = arith.constant 0 : index
    %30 = vector.load %arg6[%c0_16, %c0_17] : memref<1x32xf32, #tpu.memory_space<vmem>>, vector<1x32xf32>
    %31 = vector.shape_cast %30 : vector<1x32xf32> to vector<1x1x32xf32>
    %32 = vector.broadcast %31 : vector<1x1x32xf32> to vector<1x8x32xf32>
    %33 = arith.mulf %29, %32 : vector<1x8x32xf32>
    %cst_18 = arith.constant dense<0.000000e+00> : vector<1x8xf32>
    %34 = vector.multi_reduction <add>, %33, %cst_18 [2] : vector<1x8x32xf32> to vector<1x8xf32>
    %c0_19 = arith.constant 0 : index
    %c0_20 = arith.constant 0 : index
    %35 = vector.load %arg7[%c0_19, %c0_20] : memref<1x1xf32, #tpu.memory_space<vmem>>, vector<1x1xf32>
    %36 = vector.broadcast %35 : vector<1x1xf32> to vector<1x8xf32>
    %37 = arith.addf %34, %36 : vector<1x8xf32>
    %c0_21 = arith.constant 0 : index
    %c0_22 = arith.constant 0 : index
    %c0_23 = arith.constant 0 : index
    %38 = vector.load %arg8[%c0_21, %c0_22, %c0_23] : memref<1x1x8xf32, #tpu.memory_space<vmem>>, vector<1x1x8xf32>
    %39 = vector.shape_cast %38 : vector<1x1x8xf32> to vector<1x8xf32>
    %40 = vector.shape_cast %37 : vector<1x8xf32> to vector<1x1x8xf32>
    tpu.vector_store %arg8[%c0_21, %c0_22, %c0_23], %40 {strides = array<i32>} : memref<1x1x8xf32, #tpu.memory_space<vmem>>, vector<1x1x8xf32>,
    return
  }
  func.func @transform_0(%arg0: i32) -> (i32, i32, i32) {
    %c0_i32 = arith.constant 0 : i32
    %c0_i32_0 = arith.constant 0 : i32
    %c0_i32_1 = arith.constant 0 : i32
    return %arg0, %c0_i32, %c0_i32_0 : i32, i32, i32
  }
  func.func @transform_1(%arg0: i32) -> (i32, i32) {
    %c0_i32 = arith.constant 0 : i32
    %c0_i32_0 = arith.constant 0 : i32
    %c0_i32_1 = arith.constant 0 : i32
    return %c0_i32, %c0_i32_0 : i32, i32
  }
  func.func @transform_2(%arg0: i32) -> (i32, i32) {
    %c0_i32 = arith.constant 0 : i32
    %c0_i32_0 = arith.constant 0 : i32
    %c0_i32_1 = arith.constant 0 : i32
    return %c0_i32, %c0_i32_0 : i32, i32
  }
  func.func @transform_3(%arg0: i32) -> (i32, i32) {
    %c0_i32 = arith.constant 0 : i32
    %c0_i32_0 = arith.constant 0 : i32
    %c0_i32_1 = arith.constant 0 : i32
    return %c0_i32, %c0_i32_0 : i32, i32
  }
  func.func @transform_4(%arg0: i32) -> (i32, i32) {
    %c0_i32 = arith.constant 0 : i32
    %c0_i32_0 = arith.constant 0 : i32
    %c0_i32_1 = arith.constant 0 : i32
    return %c0_i32, %c0_i32_0 : i32, i32
  }
  func.func @transform_5(%arg0: i32) -> (i32, i32) {
    %c0_i32 = arith.constant 0 : i32
    %c0_i32_0 = arith.constant 0 : i32
    %c0_i32_1 = arith.constant 0 : i32
    return %c0_i32, %c0_i32_0 : i32, i32
  }
  func.func @transform_6(%arg0: i32) -> (i32, i32) {
    %c0_i32 = arith.constant 0 : i32
    %c0_i32_0 = arith.constant 0 : i32
    %c0_i32_1 = arith.constant 0 : i32
    return %c0_i32, %c0_i32_0 : i32, i32
  }
  func.func @transform_7(%arg0: i32) -> (i32, i32, i32) {
    %c0_i32 = arith.constant 0 : i32
    %c0_i32_0 = arith.constant 0 : i32
    %c0_i32_1 = arith.constant 0 : i32
    return %arg0, %c0_i32, %c0_i32_0 : i32, i32, i32
  }
}

</mosaic_0001>

<bundles_post_ra>
// kernel: tpu_custom_call.1
= control target key start
LH: loop header
LB: loop body
LE: loop exit
PB: predicated region body
PF: predicated region fallthrough
CT: control target
= control target key end

     0   :  { %s1051_s0 = inlined_call_operand.hbm [shape: f32[2,8,16], index: 0, kind: input, shape index: {}]   ;;  %s1052_s1 = inlined_call_operand.hbm [shape: f32[16,48], index: 1, kind: input, shape index: {}]   ;;  %s1053_s2 = inlined_call_operand.vmem [shape: f32[1,48], index: 2, kind: input, shape index: {}]   ;;  %s1054_s3 = inlined_call_operand.hbm [shape: f32[16,32], index: 3, kind: input, shape index: {}]   ;;  %s1055_s4 = inlined_call_operand.vmem [shape: f32[1,32], index: 4, kind: input, shape index: {}]   ;;  %s1056_s5 = inlined_call_operand.vmem [shape: f32[1,32], index: 5, kind: input, shape index: {}]   ;;  %s1057_s6 = inlined_call_operand.<no memory space> [shape: f32[1,1], index: 6, kind: input, shape index: {}]   ;;  %s1058_s7 = inlined_call_operand.hbm [shape: f32[2,1,8], index: 7, kind: output, shape index: {}]  }
   0x1   :  { %1059 = sst [smem:[#allocation13_spill]] %s1052_s1  ;;  %v12_v0 = vstv %s1057_s6 }
   0x2   :  { %13 = vst [vmem:[#allocation2] sm:$0x1] %v12_v0 }
   0x3   :  { %14 = vsyncpa [#allocation4], 0 }
   0x4   :  { %16 = vsyncpa [#allocation4 + $0x1], 0 }
   0x5   :  { %17 = vsyncpa [#allocation7], 0 }
   0x6   :  { %18 = vsyncpa [#allocation5], 0 }
   0x7   :  { %20 = vsyncpa [#allocation5 + $0x1], 0  ;;  %s889_s26 = smov 0   ;;  %s891_s27 = smov 0  }
   0x8   :  { %s893_s28 = smov 0   ;;  %s895_s29 = smov 0  }
   0x9 LB: > { %s1060_s1 = sld [smem:[#allocation13_spill]]  ;;  %s913_s9 = sadd.s32 4294967295, %s837_s29   ;;  %s837_s29 = sphi %s895_s29, %s1071_s29   ;;  %s833_s28 = sphi %s893_s28, %s1070_s28   ;;  %s829_s27 = sphi %s891_s27, %s1069_s27   ;;  %s825_s26 = sphi %s889_s26, %s1068_s26  }
   0xa   : > { %p579_p0 = scmp.ge.s32.totalorder %s837_s29, 1  ;;  %p47_p1 = scmp.eq.s32.totalorder %s913_s9, 0 }
   0xb   : > { %p209_p2 = scmp.lt.s32.totalorder %s837_s29, 3  ;;  %s839_s11 = smov [#allocation6]  }
   0xc   : > { %s222_s12 = sshll.u32 %s839_s11, 4  ;;  %s237_s15 = sshll.u32 %s1054_s3, 4  ;;  %s223_s12 = int_to_ptr.vmem [resolvable:$true] %s222_s12  ;;  %s238_s15 = int_to_ptr.hbm [resolvable:$true] %s237_s15 }
   0xd   : > { %p918_p3 = pnand %p579_p0, %p209_p2  ;;  %s840_s16 = smov [#allocation8]  }
   0xe   : > { %s239_s17 = sshll.u32 %s840_s16, 4  ;;  %s841_s18 = smov 128   ;;  %s240_s17 = int_to_ptr.vmem [resolvable:$true] %s239_s17 }
   0xf   : > { %s220_s8 = sshll.u32 %s1060_s1, 4  ;;  %p608_p4 = pneg %p918_p3  ;;  %s221_s8 = int_to_ptr.hbm [resolvable:$true] %s220_s8 }
  0x10   : > { %s842_s19 = smov 8   ;;  %s578_s20 = sadd.s32 4294967294, %s837_s29  }
  0x11   : > { %p609_p6 = pnand %p608_p4, %p47_p1  ;;  %s932_s21 = sadd.s32 1, %s837_s29  }
  0x12   : > { %s30_s22 = ssub.s32 %s837_s29, %s932_s21  ;;  %s33_s23 = sadd.s32 1, %s833_s28 }
  0x13   : > { %611 = dma.hbm_to_vmem [thread:$0]  (!%p609_p6), %s221_s8, 256, %s223_s12, [#allocation7], %s841_s18, %s841_s18, %s842_s19  }
  0x14   : > { %614 = dma.hbm_to_vmem [thread:$0]  (!%p609_p6), %s238_s15, 256, %s240_s17, [#allocation7], %s841_s18, %s841_s18, %s842_s19  }
  0x15   : > { %p31_p7 = scmp.eq.s32.totalorder %s30_s22, 0  ;;  %p40_p8 = scmp.ne.s32.totalorder %s833_s28, %s829_s27 }
  0x16   : > { %p41_p9 = scmp.eq.s32.totalorder %s837_s29, 0  ;;  %p46_p10 = scmp.ne.s32.totalorder %s829_s27, %s825_s26 }
  0x17   : > { %s943_s24 = scalar_select %p31_p7, %s833_s28, %s33_s23  }
  0x18   : > { %p945_p11 = por %p41_p9, %p40_p8  ;;  %p951_p12 = por %p47_p1, %p46_p10 }
  0x19   : > { %p196_p13 = scmp.eq.s32.totalorder %s913_s9, 1  ;;  %p202_p0 = scmp.eq.s32.totalorder %s578_s20, 1 }
  0x1a   : > { %p625_p2 = scmp.lt.s32.totalorder %s837_s29, 2  ;;  %s262_s30 = sand.u32 1, %s833_s28  }
  0x1b   : > { %p958_p4 = por %p196_p13, %p40_p8  ;;  %p962_p6 = por %p202_p0, %p46_p10 }
  0x1c   : > { %s583_s12 = sshll.u32 %s262_s30, 3  ;;  %s584_s13 = sshll.u32 %s837_s29, 3 }
  0x1d   : > { %s270_s16 = scalar_lea.hbm %s1051_s0, %s584_s13  ;;  %s266_s17 = scalar_lea.vmem [#allocation3], %s583_s12 }
  0x1e   : > { %s274_s18 = sshll.u32 %s266_s17, 4  ;;  %s272_s19 = sshll.u32 %s270_s16, 4  ;;  %s275_s18 = int_to_ptr.vmem [resolvable:$true] %s274_s18  ;;  %s273_s19 = int_to_ptr.hbm [resolvable:$true] %s272_s19 }
  0x1f   : > { %p972_p7 = pnand %p625_p2, %p945_p11  ;;  %s263_s22 = scalar_lea.sflag [#allocation4], %s262_s30 }
  0x20   : > { %s737_s23 = sshra.s32 %s273_s19, 4  ;;  %s744_s14 = scalar_lea.hbm %s1051_s0, 16  ;;  %s738_s23 = int_to_ptr.hbm [resolvable:$true] %s737_s23 }
  0x21   : > { %s739_s1 = scalar_lea.hbm %s738_s23, 8  ;;  %p741_p9 = pneg %p972_p7 }
  0x22   : > { %p740_p8 = scmp.ne.s32.totalorder %s738_s23, %s739_s1  ;;  %p745_p11 = scmp.lt.s32.totalorder %s738_s23, %s1051_s0 }
  0x23   : > { %p746_p0 = scmp.lt.s32.totalorder %s744_s14, %s739_s1 }
  0x24   : > { %p742_p10 = pnand %p741_p9, %p740_p8 }
  0x25   : > { %p747_p2 = por %p746_p0, %p745_p11 }
  0x26   : > { %p743_p13 = pneg %p742_p10 }
  0x28   : > { %p748_p5 = pnand %p747_p2, %p743_p13 }
  0x2a   : > { %751 = shalt.err (!%p748_p5)
}
  0x2b   : > { %618 = dma.hbm_to_vmem [thread:$0]  (!%p972_p7), %s273_s19, 128, %s275_s18, %s263_s22  }
  0x2c   : > { %283 = sbr.rel (%p918_p3) target bundleno = 1092 (0x444), region = 48  ;;  %s989_s30 = sand.u32 (!%p918_p3), 1, %s829_s27  }
  0x2d   : > { %s586_s16 = sshll.u32 (!%p918_p3), %s989_s30, 3  ;;  %s286_s17 = scalar_lea.sflag (!%p918_p3), [#allocation4], %s989_s30 }
  0x2e   : > { %s289_s12 = scalar_lea.vmem (!%p918_p3), [#allocation3], %s586_s16 }
  0x31   : > { %812 = dma.done.wait (%p951_p12), %s286_s17, 128  }
  0x32   : > { %814 = vsyncadd (%p951_p12), %s286_s17, 4294967168 }
  0x33   : > { %816 = dma.done.wait (%p47_p1), [#allocation7], 512  }
  0x34   : > { %818 = vsyncadd (%p47_p1), [#allocation7], 4294966784  ;;  %v332_v1 = vld [vmem:[#allocation6 + $0x8] sm:$0xff]  ;;  %v331_v2 = vld [vmem:[#allocation6] sm:$0xff]  ;;  %vm337_vm0 = vcmask 130048   ;;  %s843_s6 = smov 112   ;;  %v474_v32 = vlaneseq  ;;  %s489_s15 = scalar_lea.hbm %s1058_s7, %s913_s9 }
  0x35   : > { %355 = vmatpush.msra.mxu0 %v332_v1  ;;  %v330_v3 = vld [vmem:[%s289_s12] sm:$0xff]  ;;  %v670_v4 = vld [vmem:[%s1053_s2] ss:$0 sm:$0xff]  ;;  %vm388_vm1 = vcmask 64512   ;;  %s844_s18 = smov 96   ;;  %v845_v22 = vmov 0  }
  0x36   : > { %v427_v15 = vld [vmem:[#allocation8 + $0x8] sm:$0xff]  ;;  %v426_v20 = vld [vmem:[#allocation8] sm:$0xff]  ;;  %v465_v21 = vld [vmem:[#allocation2] sm:$0x1]  ;;  %668 = vset.pattern.permute.xlu2 %v845_v22  ;;  %669 = vset.pattern.permute.xlu0 %v845_v22  ;;  %vm461_vm2 = vcmask 261120   ;;  %v475_v34 = vand.u32 127, %v474_v32 }
  0x37   : > { %356 = vmatpush.msra.mxu0 %v331_v2  ;;  %449 = vmatpush.msra.mxu3 %v427_v15  ;;  %v671_v24 = vld [vmem:[%s1055_s4] ss:$0 sm:$0xff]  ;;  %s329_s25 = scalar_lea.vmem [#allocation9], %s989_s30  ;;  %s493_s17 = sshll.u32 %s489_s15, 4  ;;  %vm478_vm3 = vcmask 57344   ;;  %s494_s17 = int_to_ptr.hbm [resolvable:$true] %s493_s17 }
  0x38   : > { %589 = vmatmul.msk.f32.vlgmr.msra.gmra.mxu0 %vm337_vm0, %v330_v3  ;;  %468 = vperm.xlu2 %668, %v465_v21   ;;  %v672_v27 = vld [vmem:[%s1056_s5] ss:$0 sm:$0xff]  ;;  %s491_s16 = sshll.u32 %s329_s25, 4  ;;  %s481_s12 = scalar_lea.sflag [#allocation5], %s989_s30  ;;  %s492_s16 = int_to_ptr.vmem [resolvable:$true] %s491_s16 }
  0x39   : > { %450 = vmatpush.msra.mxu3 %v426_v20  ;;  %s781_s1 = sshra.s32 %s494_s17, 4  ;;  %s782_s1 = int_to_ptr.hbm [resolvable:$true] %s781_s1 }
  0x3a   : > { %s783_s10 = scalar_lea.hbm %s782_s1, 1  ;;  %p788_p12 = scmp.lt.s32.totalorder %s782_s1, %s1058_s7 }
  0x3b   : > { %p784_p1 = scmp.ne.s32.totalorder %s782_s1, %s783_s10 }
  0x3d   : > { %p785_p3 = pnand %p784_p1, %p958_p4 }
  0x3f   : > { %p786_p5 = pneg %p785_p3 }
  0x92   : > { %v469_v31 = vpop.permute.xlu2 %468 }
  0x93   : > { %v471_v33 = vperm.slane %v469_v31, 0 }
  0xb5   : > { %v358_v5 = vpop.f32.mrf.mxu0 }
  0xb6   : > { %v359_v6 = vadd.f32 %v670_v4, %v358_v5 }
  0xb8   : > { %362 = vrot.lane.b32.xlu0 %v359_v6, %s843_s6 }
 0x12a   : > { %v363_v7 = vpop.permute.xlu0 %362 }
 0x12b   : > { %590 = vmatpush.xpose.msk.msra.mxu1 %vm337_vm0, %v363_v7 }
 0x12e   : > { %591 = vmatmul.msk.f32.vlgmr.msra.gmra.mxu1 %vm337_vm0, %v359_v6 }
 0x1ab   : > { %v385_v8 = vpop.f32.mrf.mxu1 }
 0x1ac   : > { %v389_v9 = vsel %vm388_vm1, %v385_v8, -inf }
 0x1ad   : > { %390 = vmax.xlane.f32.xlu0 %v389_v9 }
 0x220   : > { %v391_v10 = vpop.xlane.xlu0 %390 }
 0x221   : > { %v392_v11 = vsub.f32 %v385_v8, %v391_v10 }
 0x223   : > { %v393_v12 = vmul.f32 1.442695, %v392_v11 }
 0x225   : > { %673 = vpow2.f32 %v393_v12 }
 0x22b   : > { %v674_v13 = vpop.eup %673 }
 0x22c   : > { %v395_v14 = vsel %vm388_vm1, %v674_v13, 0.0 }
 0x22d   : > { %396 = vadd.xlane.f32.xlu1 %v395_v14 }
 0x246   : > { %400 = vrot.lane.b32.xlu1 %v359_v6, %s844_s18  ;;  %s787_s18 = scalar_lea.hbm %s1058_s7, 2 }
 0x247   : > { %p789_p7 = scmp.lt.s32.totalorder %s787_s18, %s783_s10 }
 0x249   : > { %p790_p8 = por %p789_p7, %p788_p12 }
 0x24b   : > { %p791_p9 = pnand %p790_p8, %p786_p5 }
 0x2a0   : > { %v397_v16 = vpop.xlane.xlu1 %396 }
 0x2a1   : > { %675 = vrcp.f32 %v397_v16 }
 0x2a7   : > { %v676_v17 = vpop.eup %675 }
 0x2a8   : > { %v399_v19 = vmul.f32 %v676_v17, %v674_v13 }
 0x2b8   : > { %v401_v18 = vpop.permute.xlu1 %400 }
 0x2b9   : > { %421 = vmatpush.msra.mxu2 %v401_v18 }
 0x2ba   : > { %592 = vmatmul.msk.f32.vlgmr.msra.gmra.mxu2 %vm388_vm1, %v399_v19 }
 0x33d   : > { %v423_v23 = vpop.f32.mrf.mxu2 }
 0x33e   : > { %593 = vmatmul.msk.f32.vlgmr.msra.gmra.mxu3 %vm337_vm0, %v423_v23 }
 0x3c1   : > { %v452_v25 = vpop.f32.mrf.mxu3 }
 0x3c2   : > { %v453_v26 = vadd.f32 %v671_v24, %v452_v25 }
 0x3c4   : > { %v455_v28 = vmax.f32 %v453_v26, 0.0 }
 0x3c6   : > { %v460_v29 = vmul.f32 %v672_v27, %v455_v28 }
 0x3c8   : > { %v462_v30 = vsel %vm461_vm2, %v460_v29, 0.0 }
 0x3c9   : > { %463 = vadd.xlane.f32.xlu2 %v462_v30 }
 0x43c   : > { %v464_v35 = vpop.xlane.xlu2 %463 }
 0x43d   : > { %v472_v36 = vadd.f32 %v471_v33, %v464_v35 }
 0x43f   : > { %v476_v37 = vperm.slane %v472_v36, %v475_v34 }
 0x441   : > { %479 = vst.msk [vmem:[%s329_s25] sm:$0x1] %vm478_vm3, %v476_v37 }
 0x442   : > { %794 = shalt.err (!%p791_p9)
}
 0x443   : > { %606 = dma.vmem_to_hbm [thread:$0]  (%p958_p4), %s492_s16, 16, %s494_s17, %s481_s12  }
 0x444 PF: > { %s505_s30 = sand.u32 1, %s825_s26   ;;  %p1067_p10 = scmp.ge.s32.totalorder %s837_s29, 2 }
 0x445   : > { %s506_s22 = scalar_lea.sflag [#allocation5], %s505_s30 }
 0x446   : > { %p620_p13 = pnand %p1067_p10, %p962_p6 }
 0x448   : > { %p621_p11 = pneg %p620_p13 }
 0x44a   : > { %820 = dma.done.wait (%p621_p11), %s506_s22, 16  }
 0x44b   : > { %822 = vsyncadd (%p621_p11), %s506_s22, 4294967280  ;;  %p23_p0 = scmp.ge.s32.totalorder %s932_s21, 4   ;;  %s1068_s26 = smov %s829_s27 }
 0x44c   : > { %s1069_s27 = smov %s833_s28  ;;  %s1070_s28 = smov %s943_s24 }
 0x44d   : > { %s1071_s29 = smov %s932_s21  ;;  %25 = sbr.rel (!%p23_p0) target bundleno = 9 (0x9), region = 101 }
 0x452   :  { %511 = vsyncpa [#allocation4], 1 }
 0x453   :  { %513 = vsyncpa [#allocation4 + $0x1], 1 }
 0x454   :  { %514 = vsyncpa [#allocation7], 1 }
 0x455   :  { %515 = vsyncpa [#allocation5], 1 }
 0x456   :  { %517 = vsyncpa [#allocation5 + $0x1], 1 }

</bundles_post_ra>
